<compile_context>
chip_gen: v7x
topology: tpu7x:2x2x1
jax: 0.10.0
libtpu: 0.0.40
codegen_flags: <defaults>
</compile_context>

<pallas_src>
import functools

import jax
import jax.numpy as jnp
from jax.experimental import pallas as pl
from jax.experimental.pallas import tpu as pltpu

# Demo dims (kept small; all lane/sublane aligned).
MODEL_DIM = 128
HIDDEN_SIZE = 256
LOCAL_EXPERTS = 2
TOKENS_PER_EXPERT = 8

# Tiling knobs.
TOKEN_BLOCK = 256                      # M tile once T grows (keeps MXU fed)
H_TILE = 128                           # hidden reduction chunk, multiple of 128
VMEM_LIMIT_BYTES = 48 * 1024 * 1024    # < v7x 64 MiB, > v5e/v6e scoped defaults


def _round_up(n, m):
    return ((n + m - 1) // m) * m


def _llama_ffn_kernel(x_ref, w13_ref, w3_ref, o_ref, acc_ref, *, h_tile):
    """One (expert, token-tile, H-chunk) step of the fused SwiGLU FFN."""
    h = pl.program_id(2)

    @pl.when(h == 0)
    def _init():
        acc_ref[...] = jnp.zeros_like(acc_ref)

    x = x_ref[0].astype(jnp.bfloat16)            # [Tb, D]   (cast in-kernel)
    w13 = w13_ref[0, 0]                          # [D, 2*Hc] bf16 (W1|W2 chunk)

    # Single up-projection matmul for this H chunk, f32 accumulation on MXU.
    y = jnp.dot(x, w13, preferred_element_type=jnp.float32)   # [Tb, 2*Hc]
    y1 = y[:, :h_tile]                           # 128-aligned static slices
    y2 = y[:, h_tile:]

    # SwiGLU in f32 (sigmoid/exp run on the EUP slot).
    hact = (y1 * jax.nn.sigmoid(y1)) * y2        # [Tb, Hc]

    # Down-projection chunk, accumulated in the f32 VMEM scratch.
    acc_ref[...] += jnp.dot(hact.astype(w3_ref.dtype), w3_ref[0],
                            preferred_element_type=jnp.float32)   # [Tb, D]

    @pl.when(h == pl.num_programs(2) - 1)
    def _write():
        o_ref[0] = acc_ref[...].astype(o_ref.dtype)


def prepare_weights(w_fc1, w_fc2, w_fc3, h_tile=H_TILE):
    """One-time (outside jit) bf16 conversion + W1/W2 fusion.

    Returns:
      w13: [E, n_h, D, 2*h_tile] bf16 — per-H-chunk concat of W1 and W2.
      w3 : [E, H, D]             bf16.
    """
    E, D, H = w_fc1.shape
    assert H % h_tile == 0 and h_tile % 128 == 0
    n_h = H // h_tile
    w1 = jnp.asarray(w_fc1, jnp.bfloat16).reshape(E, D, n_h, h_tile)
    w2 = jnp.asarray(w_fc2, jnp.bfloat16).reshape(E, D, n_h, h_tile)
    w13 = jnp.concatenate([w1, w2], axis=-1)          # [E, D, n_h, 2*h_tile]
    w13 = jnp.transpose(w13, (0, 2, 1, 3))            # [E, n_h, D, 2*h_tile]
    w3 = jnp.asarray(w_fc3, jnp.bfloat16)             # [E, H, D]
    return w13, w3


@jax.jit
def llama_ffn_forward(x, w13, w3):
    """x: [E, T, D] (any float dtype) -> [E, T, D] bf16."""
    E, T, D = x.shape
    n_h = w13.shape[1]
    h_tile = w13.shape[-1] // 2

    # Token tiling: pad T so every output store is a dense, unmasked tile.
    block_t = min(TOKEN_BLOCK, _round_up(T, 8))
    t_pad = _round_up(T, block_t)
    if t_pad != T:
        x = jnp.pad(x, ((0, 0), (0, t_pad - T), (0, 0)))

    grid = (E, t_pad // block_t, n_h)   # expert, token tile, H chunk (reduction)

    out = pl.pallas_call(
        functools.partial(_llama_ffn_kernel, h_tile=h_tile),
        out_shape=jax.ShapeDtypeStruct((E, t_pad, D), jnp.bfloat16),
        grid=grid,
        in_specs=[
            pl.BlockSpec((1, block_t, D), lambda e, i, h: (e, i, 0)),
            pl.BlockSpec((1, 1, D, 2 * h_tile), lambda e, i, h: (e, h, 0, 0)),
            pl.BlockSpec((1, h_tile, D), lambda e, i, h: (e, h, 0)),
        ],
        out_specs=pl.BlockSpec((1, block_t, D), lambda e, i, h: (e, i, 0)),
        scratch_shapes=[pltpu.VMEM((block_t, D), jnp.float32)],
        compiler_params=pltpu.CompilerParams(
            dimension_semantics=("parallel", "parallel", "arbitrary"),
            vmem_limit_bytes=VMEM_LIMIT_BYTES),
    )(x, w13, w3)

    if t_pad != T:
        out = out[:, :T, :]
    return out


def llama_ffn_reference(x, w_fc1, w_fc2, w_fc3):
    """Pure-JAX reference using the same bf16-operand / f32-accumulate recipe."""
    x16 = x.astype(jnp.bfloat16)
    w1 = w_fc1.astype(jnp.bfloat16)
    w2 = w_fc2.astype(jnp.bfloat16)
    w3 = w_fc3.astype(jnp.bfloat16)
    y1 = jnp.einsum("etd,edh->eth", x16, w1, preferred_element_type=jnp.float32)
    y2 = jnp.einsum("etd,edh->eth", x16, w2, preferred_element_type=jnp.float32)
    h = jax.nn.silu(y1) * y2
    return jnp.einsum("eth,ehd->etd", h.astype(jnp.bfloat16), w3,
                      preferred_element_type=jnp.float32)


def init_params(key):
    # Matches torch reset_parameters(): normal_(0, 0.01).
    k1, k2, k3 = jax.random.split(key, 3)
    w_fc1 = jax.random.normal(
        k1, (LOCAL_EXPERTS, MODEL_DIM, HIDDEN_SIZE), jnp.float32) * 0.01
    w_fc2 = jax.random.normal(
        k2, (LOCAL_EXPERTS, MODEL_DIM, HIDDEN_SIZE), jnp.float32) * 0.01
    w_fc3 = jax.random.normal(
        k3, (LOCAL_EXPERTS, HIDDEN_SIZE, MODEL_DIM), jnp.float32) * 0.01
    return w_fc1, w_fc2, w_fc3


if __name__ == "__main__":
    key = jax.random.PRNGKey(0)
    pkey, xkey = jax.random.split(key)
    w_fc1, w_fc2, w_fc3 = init_params(pkey)

    x = jax.random.normal(
        xkey, (LOCAL_EXPERTS, TOKENS_PER_EXPERT, MODEL_DIM), jnp.float32)

    # One-time weight prep (bf16 persist + W1/W2 fusion) — NOT per call.
    w13, w3 = prepare_weights(w_fc1, w_fc2, w_fc3)

    out = llama_ffn_forward(x, w13, w3)
    jax.block_until_ready(out)

    ref = llama_ffn_reference(x, w_fc1, w_fc2, w_fc3)
    out_f32 = out.astype(jnp.float32)

    assert out.shape == (LOCAL_EXPERTS, TOKENS_PER_EXPERT, MODEL_DIM)
    assert bool(jnp.all(jnp.isfinite(out_f32)))
    max_err = float(jnp.max(jnp.abs(out_f32 - ref)))
    assert bool(jnp.allclose(out_f32, ref, rtol=5e-2, atol=2e-4)), (
        "max abs diff = %e" % max_err)
    print("KERNEL_OK")
</pallas_src>

<mosaic_0001>
module attributes {stable_mosaic.version = 11 : i64} {
  func.func @_llama_ffn_kernel(%arg0: i32, %arg1: i32, %arg2: i32, %arg3: memref<1x8x128xf32, #tpu.memory_space<vmem>>, %arg4: memref<1x1x128x256xbf16, #tpu.memory_space<vmem>>, %arg5: memref<1x128x128xbf16, #tpu.memory_space<vmem>>, %arg6: memref<1x8x128xbf16, #tpu.memory_space<vmem>>, %arg7: memref<8x128xf32, #tpu.memory_space<vmem>>) attributes {dimension_semantics = [#tpu.dimension_semantics<parallel>, #tpu.dimension_semantics<parallel>, #tpu.dimension_semantics<arbitrary>], iteration_bounds = array<i64: 2, 1, 2>, scalar_prefetch = 0 : i64, scratch_operands = 1 : i64, tpu.core_type = #tpu.core_type<tc>, window_params = [{transform_indices = @transform_0, window_bounds = array<i64: 1, 8, 128>}, {transform_indices = @transform_1, window_bounds = array<i64: 1, 1, 128, 256>}, {transform_indices = @transform_2, window_bounds = array<i64: 1, 128, 128>}, {transform_indices = @transform_3, window_bounds = array<i64: 1, 8, 128>}]} {
    %c0_i32 = arith.constant 0 : i32
    %0 = arith.cmpi eq, %arg2, %c0_i32 : i32
    %1 = arith.extui %0 : i1 to i32
    %c0_i32_0 = arith.constant 0 : i32
    %2 = arith.cmpi ne, %1, %c0_i32_0 : i32
    scf.if %2 {
      %cst_17 = arith.constant 0.000000e+00 : f32
      %28 = vector.broadcast %cst_17 : f32 to vector<8x128xf32>
      %c0_18 = arith.constant 0 : index
      %c0_19 = arith.constant 0 : index
      %29 = vector.load %arg7[%c0_18, %c0_19] : memref<8x128xf32, #tpu.memory_space<vmem>>, vector<8x128xf32>
      tpu.vector_store %arg7[%c0_18, %c0_19], %28 {strides = array<i32>} : memref<8x128xf32, #tpu.memory_space<vmem>>, vector<8x128xf32>,
    } else {
    }
    %c0 = arith.constant 0 : index
    %c0_1 = arith.constant 0 : index
    %c0_2 = arith.constant 0 : index
    %3 = vector.load %arg3[%c0, %c0_1, %c0_2] : memref<1x8x128xf32, #tpu.memory_space<vmem>>, vector<1x8x128xf32>
    %4 = vector.shape_cast %3 : vector<1x8x128xf32> to vector<8x128xf32>
    %5 = arith.truncf %4 : vector<8x128xf32> to vector<8x128xbf16>
    %c0_3 = arith.constant 0 : index
    %c0_4 = arith.constant 0 : index
    %c0_5 = arith.constant 0 : index
    %c0_6 = arith.constant 0 : index
    %6 = vector.load %arg4[%c0_3, %c0_4, %c0_5, %c0_6] : memref<1x1x128x256xbf16, #tpu.memory_space<vmem>>, vector<1x1x128x256xbf16>
    %7 = vector.shape_cast %6 : vector<1x1x128x256xbf16> to vector<128x256xbf16>
    %cst = arith.constant dense<0.000000e+00> : vector<8x256xf32>
    %8 = tpu.matmul %5, %7, %cst {dimension_numbers = #tpu.dot_dimension_numbers<[1], [0], [0], [1], [0, 0, 1, 1], [], []>} : vector<8x128xbf16>, vector<128x256xbf16>, vector<8x256xf32> -> vector<8x256xf32>
    %9 = vector.extract_strided_slice %8 {offsets = [0, 0], sizes = [8, 128], strides = [1, 1]} : vector<8x256xf32> to vector<8x128xf32>
    %10 = vector.extract_strided_slice %8 {offsets = [0, 128], sizes = [8, 128], strides = [1, 1]} : vector<8x256xf32> to vector<8x128xf32>
    %11 = arith.negf %9 : vector<8x128xf32>
    %12 = math.exp %11 : vector<8x128xf32>
    %cst_7 = arith.constant 1.000000e+00 : f32
    %13 = vector.broadcast %cst_7 : f32 to vector<8x128xf32>
    %14 = arith.addf %13, %12 : vector<8x128xf32>
    %15 = arith.divf %13, %14 : vector<8x128xf32>
    %16 = arith.mulf %9, %15 : vector<8x128xf32>
    %17 = arith.mulf %16, %10 : vector<8x128xf32>
    %c0_8 = arith.constant 0 : index
    %c0_9 = arith.constant 0 : index
    %18 = vector.load %arg7[%c0_8, %c0_9] : memref<8x128xf32, #tpu.memory_space<vmem>>, vector<8x128xf32>
    %19 = arith.truncf %17 : vector<8x128xf32> to vector<8x128xbf16>
    %c0_10 = arith.constant 0 : index
    %c0_11 = arith.constant 0 : index
    %c0_12 = arith.constant 0 : index
    %20 = vector.load %arg5[%c0_10, %c0_11, %c0_12] : memref<1x128x128xbf16, #tpu.memory_space<vmem>>, vector<1x128x128xbf16>
    %21 = vector.shape_cast %20 : vector<1x128x128xbf16> to vector<128x128xbf16>
    %cst_13 = arith.constant dense<0.000000e+00> : vector<8x128xf32>
    %22 = tpu.matmul %19, %21, %cst_13 {dimension_numbers = #tpu.dot_dimension_numbers<[1], [0], [0], [1], [0, 0, 1, 1], [], []>} : vector<8x128xbf16>, vector<128x128xbf16>, vector<8x128xf32> -> vector<8x128xf32>
    %23 = arith.addf %18, %22 : vector<8x128xf32>
    %c0_14 = arith.constant 0 : index
    %c0_15 = arith.constant 0 : index
    %24 = vector.load %arg7[%c0_14, %c0_15] : memref<8x128xf32, #tpu.memory_space<vmem>>, vector<8x128xf32>
    tpu.vector_store %arg7[%c0_14, %c0_15], %23 {strides = array<i32>} : memref<8x128xf32, #tpu.memory_space<vmem>>, vector<8x128xf32>,
    %c1_i32 = arith.constant 1 : i32
    %25 = arith.cmpi eq, %arg2, %c1_i32 : i32
    %26 = arith.extui %25 : i1 to i32
    %c0_i32_16 = arith.constant 0 : i32
    %27 = arith.cmpi ne, %26, %c0_i32_16 : i32
    scf.if %27 {
      %c0_17 = arith.constant 0 : index
      %c0_18 = arith.constant 0 : index
      %28 = vector.load %arg7[%c0_17, %c0_18] : memref<8x128xf32, #tpu.memory_space<vmem>>, vector<8x128xf32>
      %29 = arith.truncf %28 : vector<8x128xf32> to vector<8x128xbf16>
      %c0_19 = arith.constant 0 : index
      %c0_20 = arith.constant 0 : index
      %c0_21 = arith.constant 0 : index
      %30 = vector.load %arg6[%c0_19, %c0_20, %c0_21] : memref<1x8x128xbf16, #tpu.memory_space<vmem>>, vector<1x8x128xbf16>
      %31 = vector.shape_cast %30 : vector<1x8x128xbf16> to vector<8x128xbf16>
      %32 = vector.shape_cast %29 : vector<8x128xbf16> to vector<1x8x128xbf16>
      tpu.vector_store %arg6[%c0_19, %c0_20, %c0_21], %32 {strides = array<i32>} : memref<1x8x128xbf16, #tpu.memory_space<vmem>>, vector<1x8x128xbf16>,
    } else {
    }
    return
  }
  func.func @transform_0(%arg0: i32, %arg1: i32, %arg2: i32) -> (i32, i32, i32) {
    %c0_i32 = arith.constant 0 : i32
    %c0_i32_0 = arith.constant 0 : i32
    return %arg0, %arg1, %c0_i32 : i32, i32, i32
  }
  func.func @transform_1(%arg0: i32, %arg1: i32, %arg2: i32) -> (i32, i32, i32, i32) {
    %c0_i32 = arith.constant 0 : i32
    %c0_i32_0 = arith.constant 0 : i32
    %c0_i32_1 = arith.constant 0 : i32
    return %arg0, %arg2, %c0_i32, %c0_i32_0 : i32, i32, i32, i32
  }
  func.func @transform_2(%arg0: i32, %arg1: i32, %arg2: i32) -> (i32, i32, i32) {
    %c0_i32 = arith.constant 0 : i32
    %c0_i32_0 = arith.constant 0 : i32
    return %arg0, %arg2, %c0_i32 : i32, i32, i32
  }
  func.func @transform_3(%arg0: i32, %arg1: i32, %arg2: i32) -> (i32, i32, i32) {
    %c0_i32 = arith.constant 0 : i32
    %c0_i32_0 = arith.constant 0 : i32
    return %arg0, %arg1, %c0_i32 : i32, i32, i32
  }
}

</mosaic_0001>

<bundles_post_ra>
// kernel: llama_ffn_forward.1
= control target key start
LH: loop header
LB: loop body
LE: loop exit
PB: predicated region body
PF: predicated region fallthrough
CT: control target
= control target key end

     0   :  { %s1593_s0 = inlined_call_operand.hbm [shape: f32[2,8,128], index: 0, kind: input, shape index: {}]   ;;  %s1594_s1 = inlined_call_operand.hbm [shape: bf16[2,2,128,256], index: 1, kind: input, shape index: {}]   ;;  %s1595_s2 = inlined_call_operand.hbm [shape: bf16[2,256,128], index: 2, kind: input, shape index: {}]   ;;  %s1596_s3 = inlined_call_operand.hbm [shape: bf16[2,8,128], index: 3, kind: output, shape index: {}]  }
   0x1   :  { %1611 = sst [smem:[#allocation21_spill]] %s1594_s1 }
   0x2   :  { %1612 = sst [smem:[#allocation22_spill]] %s1596_s3 }
   0x3   :  { %8 = vsyncpa [#allocation4], 0 }
   0x4   :  { %10 = vsyncpa [#allocation4 + $0x1], 0 }
   0x5   :  { %11 = vsyncpa [#allocation7], 0 }
   0x6   :  { %13 = vsyncpa [#allocation7 + $0x1], 0 }
   0x7   :  { %14 = vsyncpa [#allocation5], 0 }
   0x8   :  { %16 = vsyncpa [#allocation5 + $0x1], 0  ;;  %s1199_s12 = smov 0   ;;  %s1201_s13 = smov 0  }
   0x9   :  { %s1203_s14 = smov 0   ;;  %s1205_s15 = smov 0  }
   0xa   :  { %s1207_s16 = smov 0   ;;  %s1209_s17 = smov 0  }
   0xb   :  { %s1211_s18 = smov 0   ;;  %s1213_s19 = smov 0  }
   0xc   :  { %s1215_s20 = smov 0   ;;  %s1217_s21 = smov 0  }
   0xd   :  { %s1219_s22 = smov 0  }
   0xe LB: > { %1613 = sst [smem:[#allocation13_spill]] %s1129_s13  ;;  %s34_s23 = sadd.s32 1, %s1157_s20  ;;  %s1165_s22 = sphi %s1219_s22, %s22_s22   ;;  %s1161_s21 = sphi %s1217_s21, %s1663_s21   ;;  %s1157_s20 = sphi %s1215_s20, %s1662_s20   ;;  %s1153_s19 = sphi %s1213_s19, %s1661_s19   ;;  %s1149_s18 = sphi %s1211_s18, %s1660_s18   ;;  %s1145_s17 = sphi %s1209_s17, %s1659_s17   ;;  %s1141_s16 = sphi %s1207_s16, %s1658_s16   ;;  %s1137_s15 = sphi %s1205_s15, %s1657_s15   ;;  %s1133_s14 = sphi %s1203_s14, %s1656_s14   ;;  %s1129_s13 = sphi %s1201_s13, %s1655_s13   ;;  %s1125_s12 = sphi %s1199_s12, %s1651_s12  }
   0xf   : > { %1614 = sst [smem:[#allocation14_spill]] %s1149_s18  ;;  %p1598_p0 = scmp.eq.s32.totalorder %s1165_s22, 0 }
  0x10   : > { %1615 = sst [smem:[#allocation15_spill]] %s1153_s19  ;;  %p1256_p1 = scmp.ge.s32.totalorder %s34_s23, 2 }
  0x11   : > { %p85_p2 = scmp.ne.s32.totalorder %s1133_s14, %s1129_s13  ;;  %p1597_p5 = scmp.lt.s32.totalorder %s1165_s22, 4 }
  0x12   : > { %s1665_s23 = smov (%p1256_p1, %s34_s23), 0  ;;  %s190_s28 = sand.u32 1, %s1165_s22  }
  0x13   : > { %1617 = sst [smem:[#allocation16_spill]] %s1665_s23  ;;  %p1271_p4 = por %p85_p2, %p1598_p0 }
  0x14   : > { %s192_s29 = sand.u32 1, %s1133_s14   ;;  %s721_s4 = sshll.u32 %s1157_s20, 5 }
  0x15   : > { %s720_s30 = sshll.u32 %s192_s29, 7  ;;  %s722_s5 = sshll.u32 %s1161_s21, 6 }
  0x16   : > { %s194_s6 = scalar_lea.vmem [#allocation6], %s720_s30  ;;  %s200_s8 = sadd.s32 %s722_s5, %s721_s4 }
  0x17   : > { %s203_s7 = sshll.u32 %s194_s6, 4  ;;  %s723_s9 = sshll.u32 %s200_s8, 6  ;;  %s1284_s7 = int_to_ptr.vmem [resolvable:$true] %s203_s7 }
  0x18   : > { %p1290_p6 = pnand %p1597_p5, %p1271_p4  ;;  %s1620_s1 = sld [smem:[#allocation21_spill]] }
  0x19   : > { %s1299_s30 = scalar_lea.sflag [#allocation7], %s190_s28 }
  0x1a   : > { %p1599_p8 = pneg %p1290_p6 }
  0x1e   : > { %s1297_s27 = scalar_lea.hbm %s1620_s1, %s723_s9  ;;  %s954_s5 = scalar_lea.hbm %s1620_s1, 8192 }
  0x1f   : > { %s949_s4 = scalar_lea.hbm %s1297_s27, 2048  ;;  %p955_p11 = scmp.lt.u32.totalorder %s1297_s27, %s1620_s1 }
  0x20   : > { %p950_p7 = scmp.ne.s32.totalorder %s1297_s27, %s949_s4  ;;  %p956_p12 = scmp.lt.u32.totalorder %s954_s5, %s949_s4 }
  0x21   : > { %p958_p2 = scmp.lt.u32.totalorder %s949_s4, %s1297_s27 }
  0x22   : > { %p952_p9 = pnand %p1599_p8, %p950_p7  ;;  %p957_p13 = por %p956_p12, %p955_p11 }
  0x24   : > { %p953_p10 = pneg %p952_p9  ;;  %p959_p4 = por %p958_p2, %p957_p13 }
  0x26   : > { %p960_p5 = pnand %p959_p4, %p953_p10 }
  0x28   : > { %963 = shalt.err (!%p960_p5)
}
  0x29   : > { %s964_s28 = scalar_lea.vmem %s1284_s7, 2048  ;;  %s1167_s9 = smov [#allocation6]  }
  0x2a   : > { %p965_p7 = scmp.ne.s32.totalorder %s1284_s7, %s964_s28  ;;  %s969_s11 = sshll.u32 %s1167_s9, 4  ;;  %s970_s11 = int_to_ptr.vmem [resolvable:$false] %s969_s11 }
  0x2b   : > { %s971_s26 = scalar_lea.vmem %s970_s11, 4096  ;;  %p972_p0 = scmp.lt.s32.totalorder %s1284_s7, %s970_s11 }
  0x2c   : > { %p967_p9 = pnand %p965_p7, %p1599_p8  ;;  %p973_p11 = scmp.lt.s32.totalorder %s971_s26, %s964_s28 }
  0x2e   : > { %p968_p3 = pneg %p967_p9  ;;  %p974_p12 = por %p973_p11, %p972_p0 }
  0x30   : > { %p975_p13 = pnand %p974_p12, %p968_p3 }
  0x32   : > { %978 = shalt.err (!%p975_p13)
}
  0x33   : > { %s1168_s4 = smov 128   ;;  %s1169_s25 = smov 8  }
  0x34   : > { %807 = dma.hbm_to_vmem [thread:$0]  (!%p1290_p6), %s1297_s27, 2048, %s1284_s7, %s1299_s30, %s1168_s4, %s1168_s4, %s1169_s25  }
  0x35   : > { %s724_s5 = sshll.u32 %s192_s29, 6  ;;  %p728_p0 = scmp.ge.s32.totalorder %s1165_s22, 1 }
  0x36   : > { %p234_p3 = scmp.lt.s32.totalorder %s1165_s22, 5  ;;  %s217_s6 = scalar_lea.vmem [#allocation8], %s724_s5 }
  0x37   : > { %s1331_s8 = sshll.u32 %s217_s6, 4  ;;  %s1338_s9 = sadd.s32 4294967295, %s1165_s22   ;;  %s1446_s8 = int_to_ptr.vmem [resolvable:$true] %s1331_s8 }
  0x38   : > { %p1333_p5 = pnand %p728_p0, %p234_p3  ;;  %s715_s27 = sadd.s32 4294967294, %s1165_s22  }
  0x39   : > { %s41_s29 = sadd.s32 1, %s1161_s21  ;;  %s50_s7 = sadd.s32 1, %s1145_s17 }
  0x3a   : > { %s1621_s28 = scalar_select %p1333_p5, 1, 0 }
  0x3b   : > { %s1667_s29 = smov (!%p1256_p1, %s41_s29), %s1161_s21  ;;  %p57_p10 = scmp.ne.s32.totalorder %s1145_s17, %s1141_s16 }
  0x3c   : > { %p63_p2 = scmp.ne.s32.totalorder %s1141_s16, %s1137_s15  ;;  %p43_p4 = scmp.ge.s32.totalorder %s1667_s29, 2 }
  0x3d   : > { %p64_p7 = scmp.eq.s32.totalorder %s1338_s9, 0  ;;  %p1622_p9 = scmp.eq.s32.totalorder %s1165_s22, 0 }
  0x3e   : > { %p145_p12 = scmp.eq.s32.totalorder %s1338_s9, 3  ;;  %s1669_s29 = smov (%p43_p4, %s1667_s29), 0 }
  0x3f   : > { %p1353_p11 = por %p1622_p9, %p57_p10  ;;  %1624 = sst [smem:[#allocation17_spill]] %s1669_s29 }
  0x40   : > { %p1363_p1 = por %p64_p7, %p63_p2  ;;  %p1626_p13 = scmp.ne.s32.totalorder %s1129_s13, %s1125_s12 }
  0x41   : > { %s45_s4 = ssub.s32 %s1161_s21, %s1669_s29  ;;  %p1376_p3 = por %p145_p12, %p57_p10 }
  0x42   : > { %s1625_s24 = scalar_select %p1363_p1, 1, 0 }
  0x43   : > { %p1370_p0 = por %p1626_p13, %p64_p7  ;;  %p48_p4 = scmp.eq.s32.totalorder %s45_s4, 0 }
  0x44   : > { %s1629_s25 = scalar_select %p1376_p3, 1, 0 }
  0x45   : > { %s1627_s26 = scalar_select %p1370_p0, 1, 0 }
  0x46   : > { %1630 = sst [smem:[#allocation19_spill]] %s1629_s25  ;;  %s1631_s5 = ssub.s32 %s1157_s20, %s1665_s23 }
  0x47   : > { %1628 = sst [smem:[#allocation18_spill]] %s1627_s26  ;;  %s75_s6 = sor.u32 %s1631_s5, %s45_s4 }
  0x48   : > { %p76_p9 = scmp.eq.s32.totalorder %s75_s6, 0  ;;  %p151_p8 = scmp.eq.s32.totalorder %s715_s27, 3 }
  0x49   : > { %s1384_s1 = scalar_select %p48_p4, %s1145_s17, %s50_s7  }
  0x4a   : > { %s1633_s12 = sadd.s32 1, %s1133_s14  ;;  %p1394_p7 = por %p151_p8, %p63_p2 }
  0x4b   : > { %1632 = sst [smem:[#allocation20_spill]] %s1384_s1  ;;  %s171_s19 = sand.u32 1, %s1145_s17  }
  0x4c   : > { %s1389_s3 = scalar_select %p76_p9, %s1133_s14, %s1633_s12  }
  0x4d   : > { %s1634_s29 = scalar_select %p1394_p7, 1, 0 }
  0x4e   : > { %s718_s18 = sshll.u32 %s171_s19, 3  ;;  %s719_s25 = sshll.u32 %s1161_s21, 7 }
  0x4f   : > { %s1403_s23 = scalar_lea.hbm %s1593_s0, %s719_s25  ;;  %s175_s27 = scalar_lea.vmem [#allocation3], %s718_s18 }
  0x50   : > { %s183_s7 = sshll.u32 %s175_s27, 4  ;;  %p1635_p8 = scmp.lt.s32.totalorder %s1165_s22, 4  ;;  %s1405_s7 = int_to_ptr.vmem [resolvable:$true] %s183_s7 }
  0x51   : > { %s725_s5 = sshll.u32 %s1157_s20, 4  ;;  %s726_s13 = sshll.u32 %s1161_s21, 5 }
  0x52   : > { %p1411_p10 = pnand %p1635_p8, %p1353_p11  ;;  %s1417_s26 = sadd.s32 %s726_s13, %s725_s5 }
  0x53   : > { %s172_s25 = scalar_lea.sflag [#allocation4], %s171_s19  ;;  %s979_s6 = scalar_lea.hbm %s1403_s23, 128 }
  0x54   : > { %p980_p2 = scmp.ne.s32.totalorder %s1403_s23, %s979_s6  ;;  %p981_p12 = pneg %p1411_p10 }
  0x55   : > { %s984_s12 = scalar_lea.hbm %s1593_s0, 256  ;;  %p985_p11 = scmp.lt.u32.totalorder %s1403_s23, %s1593_s0 }
  0x56   : > { %p982_p13 = pnand %p981_p12, %p980_p2  ;;  %p986_p9 = scmp.lt.u32.totalorder %s984_s12, %s979_s6 }
  0x57   : > { %p988_p7 = scmp.lt.u32.totalorder %s979_s6, %s1403_s23 }
  0x58   : > { %p983_p4 = pneg %p982_p13  ;;  %p987_p8 = por %p986_p9, %p985_p11 }
  0x5a   : > { %p989_p3 = por %p988_p7, %p987_p8 }
  0x5c   : > { %p990_p0 = pnand %p989_p3, %p983_p4 }
  0x5e   : > { %993 = shalt.err (!%p990_p0)
}
  0x5f   : > { %s994_s19 = scalar_lea.vmem %s1405_s7, 128  ;;  %s1170_s5 = smov [#allocation3]  }
  0x60   : > { %p995_p2 = scmp.ne.s32.totalorder %s1405_s7, %s994_s19  ;;  %s999_s13 = sshll.u32 %s1170_s5, 4  ;;  %s1000_s13 = int_to_ptr.vmem [resolvable:$false] %s999_s13 }
  0x61   : > { %s1001_s1 = scalar_lea.vmem %s1000_s13, 256  ;;  %p1002_p5 = scmp.lt.s32.totalorder %s1405_s7, %s1000_s13 }
  0x62   : > { %p997_p13 = pnand %p995_p2, %p981_p12  ;;  %p1003_p11 = scmp.lt.s32.totalorder %s1001_s1, %s994_s19 }
  0x64   : > { %p998_p1 = pneg %p997_p13  ;;  %p1004_p9 = por %p1003_p11, %p1002_p5 }
  0x66   : > { %p1005_p7 = pnand %p1004_p9, %p998_p1 }
  0x68   : > { %1008 = shalt.err (!%p1005_p7)
}
  0x69   : > { %804 = dma.hbm_to_vmem [thread:$0]  (!%p1411_p10), %s1403_s23, 128, %s1405_s7, %s172_s25  }
  0x6a   : > { %s727_s6 = sshll.u32 %s1417_s26, 6  ;;  %p1637_p1 = pneg %p1290_p6 }
  0x6b   : > { %s1451_s12 = scalar_lea.hbm %s1595_s2, %s727_s6  ;;  %s1014_s7 = scalar_lea.hbm %s1595_s2, 4096 }
  0x6c   : > { %s1009_s27 = scalar_lea.hbm %s1451_s12, 1024  ;;  %p1015_p10 = scmp.lt.u32.totalorder %s1451_s12, %s1595_s2 }
  0x6d   : > { %p1010_p5 = scmp.ne.s32.totalorder %s1451_s12, %s1009_s27  ;;  %p1016_p12 = scmp.lt.u32.totalorder %s1014_s7, %s1009_s27 }
  0x6e   : > { %p1018_p8 = scmp.lt.u32.totalorder %s1009_s27, %s1451_s12 }
  0x6f   : > { %p1012_p0 = pnand %p1010_p5, %p1637_p1  ;;  %p1017_p4 = por %p1016_p12, %p1015_p10 }
  0x71   : > { %p1013_p3 = pneg %p1012_p0  ;;  %p1019_p2 = por %p1018_p8, %p1017_p4 }
  0x73   : > { %p1020_p13 = pnand %p1019_p2, %p1013_p3 }
  0x75   : > { %1023 = shalt.err (!%p1020_p13)
}
  0x76   : > { %s1024_s19 = scalar_lea.vmem %s1446_s8, 1024  ;;  %p1638_p9 = pmov %p1637_p1 }
  0x77   : > { %p1025_p11 = scmp.ne.s32.totalorder %s1446_s8, %s1024_s19  ;;  %s1171_s5 = smov [#allocation8]  }
  0x78   : > { %s1029_s13 = sshll.u32 %s1171_s5, 4  ;;  %s1030_s13 = int_to_ptr.vmem [resolvable:$false] %s1029_s13 }
  0x79   : > { %p1027_p7 = pnand %p1025_p11, %p1638_p9  ;;  %s1031_s1 = scalar_lea.vmem %s1030_s13, 2048 }
  0x7a   : > { %p1032_p1 = scmp.lt.s32.totalorder %s1446_s8, %s1030_s13  ;;  %p1033_p0 = scmp.lt.s32.totalorder %s1031_s1, %s1024_s19 }
  0x7b   : > { %p1028_p5 = pneg %p1027_p7 }
  0x7c   : > { %p1034_p10 = por %p1033_p0, %p1032_p1 }
  0x7e   : > { %p1035_p12 = pnand %p1034_p10, %p1028_p5 }
  0x80   : > { %1038 = shalt.err (!%p1035_p12)
}
  0x81   : > { %s1172_s6 = smov 64   ;;  %s1173_s18 = smov 4  }
  0x82   : > { %810 = dma.hbm_to_vmem [thread:$0]  (!%p1290_p6), %s1451_s12, 1024, %s1446_s8, %s1299_s30, %s1172_s6, %s1172_s6, %s1173_s18  }
  0x83   : > { %p1639_p3 = scmp.ne.s32.totalorder %s1621_s28, 0 }
  0x84   : > { %s1480_s11 = sand.u32 (!%p1639_p3), 1, %s1141_s16   ;;  %p1640_p4 = scmp.ne.s32.totalorder (!%p1639_p3), %s1625_s24, 0 }
  0x85   : > { %238 = sbr.rel (%p1639_p3) target bundleno = 697 (0x2b9), region = 32  ;;  %s729_s27 = sshll.u32 (!%p1639_p3), %s1480_s11, 3 }
  0x86   : > { %s241_s4 = scalar_lea.sflag (!%p1639_p3), [#allocation4], %s1480_s11  ;;  %s1484_s23 = scalar_lea.vmem (!%p1639_p3), [#allocation3], %s729_s27 }
  0x8c   : > { %1112 = dma.done.wait (%p1640_p4), %s241_s4, 128  }
  0x8d   : > { %1114 = vsyncadd (%p1640_p4), %s241_s4, 4294967168  ;;  %s1641_s10 = sld [smem:[#allocation13_spill]]  ;;  %s1642_s30 = sld [smem:[#allocation18_spill]] }
  0x8e   : > { %s249_s8 = sand.u32 1, %s1338_s9  }
  0x8f   : > { %s250_s7 = scalar_lea.sflag [#allocation7], %s249_s8 }
  0x93   : > { %s251_s28 = sand.u32 1, %s1641_s10   ;;  %p1643_p6 = scmp.ne.s32.totalorder %s1642_s30, 0 }
  0x94   : > { %s730_s12 = sshll.u32 %s251_s28, 7 }
  0x95   : > { %s1492_s26 = scalar_lea.vmem [#allocation6], %s730_s12 }
  0x96   : > { %1116 = dma.done.wait (%p1643_p6), %s250_s7, 3072  }
  0x97   : > { %1118 = vsyncadd (%p1643_p6), %s250_s7, 4294964224  ;;  %s731_s25 = sshll.u32 %s251_s28, 6  ;;  %s732_s19 = sshll.u32 %s1480_s11, 2 }
  0x98   : > { %s1499_s5 = scalar_lea.vmem [#allocation8], %s731_s25  ;;  %s1501_s24 = scalar_lea.vmem [#allocation9], %s732_s19 }
  0x99   : > { %s1644_s13 = sld [smem:[#allocation14_spill]] }
  0x9f   : > { %p733_p8 = scmp.ne.s32.totalorder %s1644_s13, 0 }
  0xa0   : > { %v1174_v0 = vmov (!%p733_p8), 0.0  }
  0xa1   : > { %300 = sbr.rel (%p733_p8) target bundleno = 168 (0xa8), region = 48  ;;  %301 = vst [vmem:[#allocation2] sm:$0xff] (!%p733_p8), %v1174_v0 }
  0xa8 PF: > { %v913_v1 = vld [vmem:[%s1492_s26 + $0x4] ss:$8 sps:$4 sm:$0xff]   ;;  %v915_v2 = vld [vmem:[%s1492_s26] ss:$8 sps:$4 sm:$0xff]   ;;  %v1175_v3 = vmov 0   ;;  %v302_v18 = vld [vmem:[%s1484_s23] sm:$0xff] }
  0xa9   : > { %432 = vmatprep.mubr.bf16.mxu0 %v1175_v3  ;;  %400 = vmatprep.subr.bf16.mxu0 %v913_v1  ;;  %v916_v4 = vld [vmem:[%s1492_s26 + $0x14] ss:$8 sps:$4 sm:$0xff]   ;;  %v918_v5 = vld [vmem:[%s1492_s26 + $0x10] ss:$8 sps:$4 sm:$0xff]   ;;  %v919_v6 = vld [vmem:[%s1492_s26 + $0x24] ss:$8 sps:$4 sm:$0xff]   ;;  %v303_v19 = vpack.c.bf16 %v302_v18, %v302_v18 }
  0xaa   : > { %401 = vmatpush1.bf16.msra.mxu0 %v915_v2  ;;  %v921_v7 = vld [vmem:[%s1492_s26 + $0x20] ss:$8 sps:$4 sm:$0xff]   ;;  %v922_v8 = vld [vmem:[%s1492_s26 + $0x34] ss:$8 sps:$4 sm:$0xff]   ;;  %v924_v9 = vld [vmem:[%s1492_s26 + $0x30] ss:$8 sps:$4 sm:$0xff]  }
  0xab   : > { %402 = vmatprep.subr.bf16.mxu0 %v916_v4  ;;  %v925_v10 = vld [vmem:[%s1492_s26 + $0x44] ss:$8 sps:$4 sm:$0xff]   ;;  %v927_v11 = vld [vmem:[%s1492_s26 + $0x40] ss:$8 sps:$4 sm:$0xff]   ;;  %v928_v12 = vld [vmem:[%s1492_s26 + $0x54] ss:$8 sps:$4 sm:$0xff]  }
  0xac   : > { %v930_v13 = vld [vmem:[%s1492_s26 + $0x50] ss:$8 sps:$4 sm:$0xff]   ;;  %v931_v14 = vld [vmem:[%s1492_s26 + $0x64] ss:$8 sps:$4 sm:$0xff]   ;;  %v933_v15 = vld [vmem:[%s1492_s26 + $0x60] ss:$8 sps:$4 sm:$0xff]  }
  0xad   : > { %v934_v16 = vld [vmem:[%s1492_s26 + $0x74] ss:$8 sps:$4 sm:$0xff]   ;;  %v936_v17 = vld [vmem:[%s1492_s26 + $0x70] ss:$8 sps:$4 sm:$0xff]   ;;  %v937_v20 = vld [vmem:[%s1499_s5] sm:$0xff]   ;;  %v1176_v21 = vmov 0.0  }
  0xae   : > { %403 = vmatpush1.bf16.msra.mxu0 %v918_v5  ;;  %773 = vmatprep.subr.bf16.mxu1 %v1176_v21  ;;  %v938_v22 = vld [vmem:[%s1499_s5 + $0x8] sm:$0xff]   ;;  %v939_v23 = vld [vmem:[%s1499_s5 + $0x10] sm:$0xff]   ;;  %v940_v24 = vld [vmem:[%s1499_s5 + $0x18] sm:$0xff]   ;;  %vm1177_vm0 = vmmov 0   ;;  %s1645_s9 = sld [smem:[#allocation14_spill]] }
  0xaf   : > { %404 = vmatprep.subr.bf16.mxu0 %v919_v6  ;;  %774 = vmatpush3.bf16.msra.mxu1 %v937_v20  ;;  %v941_v25 = vld [vmem:[%s1499_s5 + $0x20] sm:$0xff]   ;;  %v942_v26 = vld [vmem:[%s1499_s5 + $0x28] sm:$0xff]   ;;  %v943_v27 = vld [vmem:[%s1499_s5 + $0x30] sm:$0xff]  }
  0xb0   : > { %775 = vmatprep.subr.bf16.mxu1 %v1176_v21  ;;  %v944_v28 = vld [vmem:[%s1499_s5 + $0x38] sm:$0xff]   ;;  %789 = vmatprep.mubr.msk.bf16.mxu1 %vm1177_vm0, %v1176_v21  ;;  %v449_v40 = vld [vmem:[#allocation2] sm:$0xff] }
  0xb2   : > { %405 = vmatpush1.bf16.msra.mxu0 %v921_v7 }
  0xb3   : > { %406 = vmatprep.subr.bf16.mxu0 %v922_v8  ;;  %776 = vmatpush3.bf16.msra.mxu1 %v938_v22 }
  0xb4   : > { %777 = vmatprep.subr.bf16.mxu1 %v1176_v21  ;;  %p759_p2 = scmp.ne.s32.totalorder %s1645_s9, 1 }
  0xb6   : > { %407 = vmatpush1.bf16.msra.mxu0 %v924_v9 }
  0xb7   : > { %408 = vmatprep.subr.bf16.mxu0 %v925_v10  ;;  %778 = vmatpush3.bf16.msra.mxu1 %v939_v23 }
  0xb8   : > { %779 = vmatprep.subr.bf16.mxu1 %v1176_v21 }
  0xba   : > { %409 = vmatpush1.bf16.msra.mxu0 %v927_v11 }
  0xbb   : > { %410 = vmatprep.subr.bf16.mxu0 %v928_v12  ;;  %780 = vmatpush3.bf16.msra.mxu1 %v940_v24 }
  0xbc   : > { %781 = vmatprep.subr.bf16.mxu1 %v1176_v21 }
  0xbe   : > { %411 = vmatpush1.bf16.msra.mxu0 %v930_v13 }
  0xbf   : > { %412 = vmatprep.subr.bf16.mxu0 %v931_v14  ;;  %782 = vmatpush3.bf16.msra.mxu1 %v941_v25 }
  0xc0   : > { %783 = vmatprep.subr.bf16.mxu1 %v1176_v21 }
  0xc2   : > { %413 = vmatpush1.bf16.msra.mxu0 %v933_v15 }
  0xc3   : > { %414 = vmatprep.subr.bf16.mxu0 %v934_v16  ;;  %784 = vmatpush3.bf16.msra.mxu1 %v942_v26 }
  0xc4   : > { %785 = vmatprep.subr.bf16.mxu1 %v1176_v21 }
  0xc6   : > { %415 = vmatpush1.bf16.msra.mxu0 %v936_v17 }
  0xc7   : > { %786 = vmatpush3.bf16.msra.mxu1 %v943_v27 }
  0xc8   : > { %787 = vmatprep.subr.bf16.mxu1 %v1176_v21 }
  0xc9   : > { %433 = vmatmul.mubr.bf16.vlgmr.msra.gmra.mrb[0].mxu0 %v303_v19 }
  0xcb   : > { %788 = vmatpush3.bf16.msra.mxu1 %v944_v28 }
 0x19c   : > { %v434_v29 = vpop.f32.mrb[0].mxu0 }
 0x19d   : > { %v750_v30 = vmul.f32 -1.442695, %v434_v29  ;;  %v436_v31 = vpop.f32.mrb[1].mxu0 }
 0x19e   : > { %v438_v32 = vpop.f32.mrb[2].mxu0 }
 0x19f   : > { %945 = vpow2.f32 %v750_v30  ;;  %v439_v33 = vpop.f32.mrb[3].mxu0 }
 0x1a9   : > { %v946_v34 = vpop.eup %945 }
 0x1aa   : > { %v444_v35 = vadd.f32 1.0, %v946_v34 }
 0x1ac   : > { %947 = vrcp.f32 %v444_v35 }
 0x1b6   : > { %v948_v36 = vpop.eup %947 }
 0x1b7   : > { %v447_v37 = vmul.f32 %v948_v36, %v434_v29 }
 0x1b9   : > { %v448_v38 = vmul.f32 %v447_v37, %v436_v31 }
 0x1bb   : > { %v450_v39 = vpack.c.bf16 %v448_v38, %v448_v38 }
 0x1bd   : > { %790 = vmatmul.mubr.bf16.vlgmr.msra.gmra.mrb[0].mxu1 %v450_v39 }
 0x28d   : > { %560 = sbr.rel (%p759_p2) target bundleno = 670 (0x29e), region = 52 }
 0x290   : > { %v549_v41 = vpop.f32.mrb[0].mxu1 }
 0x291   : > { %v555_v42 = vadd.f32 %v549_v41, %v449_v40  ;;  %v791_v43 = vpop.f32.mrb[1].mxu1 }
 0x292   : > { %v552_v44 = vpop.f32.mrb[2].mxu1 }
 0x293   : > { %556 = vst [vmem:[#allocation2] sm:$0xff] %v555_v42  ;;  %v792_v45 = vpop.f32.mrb[3].mxu1 }
 0x29a   : > { %v561_v46 = vld [vmem:[#allocation2] sm:$0xff] }
 0x29b   : > { %v562_v47 = vpack.c.bf16 %v561_v46, %v561_v46 }
 0x29d   : > { %563 = vst [vmem:[%s1501_s24] sm:$0xf] %v562_v47 }
 0x29e PF: > { %s1646_s1 = sld [smem:[#allocation15_spill]]  ;;  %s1647_s6 = sld [smem:[#allocation19_spill]] }
 0x29f   : > { %s1648_s23 = sld [smem:[#allocation22_spill]]  ;;  %s579_s30 = sshll.u32 %s1501_s24, 4  ;;  %s580_s30 = int_to_ptr.vmem [resolvable:$true] %s579_s30 }
 0x2a0   : > { %s565_s8 = scalar_lea.sflag [#allocation5], %s1480_s11  ;;  %s1039_s28 = scalar_lea.vmem %s580_s30, 64 }
 0x2a1   : > { %p1040_p13 = scmp.ne.s32.totalorder %s580_s30, %s1039_s28  ;;  %s1178_s12 = smov [#allocation9]  }
 0x2a2   : > { %s1043_s7 = sshll.u32 %s1178_s12, 4  ;;  %s1044_s7 = int_to_ptr.vmem [resolvable:$false] %s1043_s7 }
 0x2a3   : > { %s1045_s26 = scalar_lea.vmem %s1044_s7, 128  ;;  %p1046_p5 = scmp.lt.s32.totalorder %s580_s30, %s1044_s7 }
 0x2a4   : > { %s761_s18 = sshll.u32 %s1646_s1, 6  ;;  %p1649_p11 = scmp.ne.s32.totalorder %s1647_s6, 0 }
 0x2a5   : > { %s1535_s10 = scalar_lea.hbm %s1648_s23, %s761_s18  ;;  %p1047_p1 = scmp.lt.s32.totalorder %s1045_s26, %s1039_s28 }
 0x2a6   : > { %p1041_p9 = pnand %p1040_p13, %p1649_p11 }
 0x2a7   : > { %p1048_p0 = por %p1047_p1, %p1046_p5 }
 0x2a8   : > { %p1042_p7 = pneg %p1041_p9 }
 0x2aa   : > { %p1049_p10 = pnand %p1048_p0, %p1042_p7 }
 0x2ac   : > { %1052 = shalt.err (!%p1049_p10)
}
 0x2ad   : > { %s1053_s11 = scalar_lea.hbm %s1535_s10, 64  ;;  %s1057_s5 = scalar_lea.hbm %s1648_s23, 128 }
 0x2ae   : > { %p1054_p12 = scmp.ne.s32.totalorder %s1535_s10, %s1053_s11  ;;  %p1058_p6 = scmp.lt.u32.totalorder %s1535_s10, %s1648_s23 }
 0x2af   : > { %p1059_p8 = scmp.lt.u32.totalorder %s1057_s5, %s1053_s11  ;;  %p1061_p13 = scmp.lt.u32.totalorder %s1053_s11, %s1535_s10 }
 0x2b0   : > { %p1055_p3 = pnand %p1054_p12, %p1649_p11 }
 0x2b1   : > { %p1060_p2 = por %p1059_p8, %p1058_p6 }
 0x2b2   : > { %p1056_p4 = pneg %p1055_p3 }
 0x2b3   : > { %p1062_p9 = por %p1061_p13, %p1060_p2 }
 0x2b5   : > { %p1063_p7 = pnand %p1062_p9, %p1056_p4 }
 0x2b7   : > { %1066 = shalt.err (!%p1063_p7)
}
 0x2b8   : > { %799 = dma.vmem_to_hbm [thread:$0]  (%p1649_p11), %s580_s30, 64, %s1535_s10, %s565_s8  }
 0x2b9 PF: > { %p816_p5 = scmp.ge.s32.totalorder %s1165_s22, 2  ;;  %s591_s9 = sand.u32 1, %s1137_s15  }
 0x2ba   : > { %p1650_p1 = scmp.ne.s32.totalorder %s1634_s29, 0  ;;  %s592_s1 = scalar_lea.sflag [#allocation5], %s591_s9 }
 0x2bc   : > { %p812_p0 = pnand %p816_p5, %p1650_p1 }
 0x2be   : > { %1120 = dma.done.wait (!%p812_p0), %s592_s1, 64  }
 0x2bf   : > { %1122 = vsyncadd (!%p812_p0), %s592_s1, 4294967232  ;;  %s22_s22 = sadd.s32 1, %s1165_s22   ;;  %s1651_s12 = sld [smem:[#allocation13_spill]] }
 0x2c0   : > { %p19_p10 = scmp.ge.s32.totalorder %s22_s22, 6   ;;  %s1652_s6 = sld [smem:[#allocation20_spill]] }
 0x2c1   : > { %s1653_s27 = sld [smem:[#allocation16_spill]]  ;;  %s1654_s4 = sld [smem:[#allocation17_spill]] }
 0x2c2   : > { %s1655_s13 = smov %s1133_s14  ;;  %s1656_s14 = smov %s1389_s3 }
 0x2c3   : > { %s1657_s15 = smov %s1141_s16  ;;  %s1658_s16 = smov %s1145_s17 }
 0x2c4   : > { %s1660_s18 = smov %s1157_s20  ;;  %s1661_s19 = smov %s1161_s21 }
 0x2c5   :  { %21 = sbr.rel (!%p19_p10) target bundleno = 14 (0xe), region = 109 }
 0x2c6   : > { %s1659_s17 = smov %s1652_s6 }
 0x2c7   : > { %s1662_s20 = smov %s1653_s27  ;;  %s1663_s21 = smov %s1654_s4 }
 0x2cc   :  { %597 = vsyncpa [#allocation4], 1 }
 0x2cd   :  { %599 = vsyncpa [#allocation4 + $0x1], 1 }
 0x2ce   :  { %600 = vsyncpa [#allocation7], 1 }
 0x2cf   :  { %602 = vsyncpa [#allocation7 + $0x1], 1 }
 0x2d0   :  { %603 = vsyncpa [#allocation5], 1 }
 0x2d1   :  { %605 = vsyncpa [#allocation5 + $0x1], 1 }

</bundles_post_ra>
